<compile_context>
chip_gen: v6e
topology: v6e:2x2x1
jax: 0.10.0
libtpu: 0.0.40
codegen_flags: <defaults>
</compile_context>

<pallas_src>
import functools

import jax
import jax.numpy as jnp
from jax import lax
from jax.experimental import pallas as pl
from jax.experimental.pallas import tpu as pltpu

LANE = 128
SUBLANE = 8

MAX_BLOCK_ROWS = 8192      # 4 MiB / f32 input tile; 16 MiB double-buffered
CHUNK_ROWS = 512           # inner-loop chunk: ~256 KiB temporaries
MIN_KERNEL_ELEMS = 1 << 18  # below this, the jnp fast path wins
VMEM_LIMIT_BYTES = 48 * 1024 * 1024
# TODO(synk): optionally sweep pipeline_mode=pl.Buffered(3) on the input
# BlockSpecs at large tiles; keep only if measurably faster.


def _dice_partials_kernel(x_ref, t_ref, prod_out_ref, sum_out_ref, *,
                          block_rows, chunk_rows, steps_per_core,
                          grid_blocks, total_rows, needs_mask, has_phantom):
    """Per-core partials of sum(x*t) and sum(x+t) as (8,128) f32 blocks."""
    p = pl.program_id(0)
    s = pl.program_id(1)
    block_idx = p * steps_per_core + s

    @pl.when(s == 0)
    def _init():
        prod_out_ref[...] = jnp.zeros_like(prod_out_ref)
        sum_out_ref[...] = jnp.zeros_like(sum_out_ref)

    n_chunks = block_rows // chunk_rows
    groups = chunk_rows // SUBLANE

    def accumulate(masked):
        # Chunked inner loop so only (chunk_rows,128) temporaries exist.
        @pl.loop(0, n_chunks)
        def _chunk(c):
            r0 = pl.multiple_of(c * chunk_rows, chunk_rows)
            x = x_ref[pl.ds(r0, chunk_rows), :].astype(jnp.float32)
            t = t_ref[pl.ds(r0, chunk_rows), :].astype(jnp.float32)
            if masked:
                # Zero invalid rows BEFORE the mul/add: stale NaN/Inf garbage
                # in the ragged trailing block must not reach the sums.
                rid = (block_idx * block_rows + r0
                       + lax.broadcasted_iota(jnp.int32, (chunk_rows, LANE), 0))
                valid = rid < total_rows
                x = jnp.where(valid, x, 0.0)
                t = jnp.where(valid, t, 0.0)
            # Reduce only the leading (vreg-group) axis: pure VPU adds, no XLU.
            prod = jnp.sum((x * t).reshape(groups, SUBLANE, LANE), axis=0)
            both = jnp.sum((x + t).reshape(groups, SUBLANE, LANE), axis=0)
            prod_out_ref[0] += prod
            sum_out_ref[0] += both

    if needs_mask:
        # Pay the mask only on the final real block; a phantom padded step
        # (block_idx >= grid_blocks) matches neither condition and is skipped.
        @pl.when(block_idx == grid_blocks - 1)
        def _ragged():
            accumulate(masked=True)

        @pl.when(block_idx < grid_blocks - 1)
        def _full():
            accumulate(masked=False)
    elif has_phantom:
        @pl.when(block_idx < grid_blocks)
        def _full():
            accumulate(masked=False)
    else:
        accumulate(masked=False)


def dice_loss(inputs, targets, smooth=1.0, *,
              max_block_rows=MAX_BLOCK_ROWS,
              chunk_rows=CHUNK_ROWS,
              min_kernel_elems=MIN_KERNEL_ELEMS,
              vmem_limit_bytes=VMEM_LIMIT_BYTES):
    """Pallas TPU implementation of DiceLoss.forward."""
    x = inputs.reshape(-1)
    t = targets.reshape(-1)
    n = x.shape[0]

    def _dice(intersection, total):
        dice = (2.0 * intersection + smooth) / (total + smooth)
        return 1.0 - dice

    # Sanitize tile parameters: chunk_rows a multiple of 8 (sublanes),
    # block_rows a multiple of chunk_rows (so the (8,128) constraint and the
    # in-kernel reshape are always valid).
    chunk_rows = max(SUBLANE, (chunk_rows // SUBLANE) * SUBLANE)

    # Lane-aligned main region; the (<128 element) tail is reduced in the
    # wrapper -- no full-array jnp.pad copy on the hot path.
    n_main = (n // LANE) * LANE
    rows = n_main // LANE

    block_rows = min(max_block_rows, rows)
    block_rows = (block_rows // chunk_rows) * chunk_rows

    if n_main < min_kernel_elems or block_rows < chunk_rows:
        # Tiny-input fast path: pallas_call launch/warmup would dominate.
        xf = x.astype(jnp.float32)
        tf = t.astype(jnp.float32)
        return _dice(jnp.sum(xf * tf), jnp.sum(xf) + jnp.sum(tf))

    if n_main < n:
        x_tail = x[n_main:].astype(jnp.float32)
        t_tail = t[n_main:].astype(jnp.float32)
        tail_prod = jnp.sum(x_tail * t_tail)
        tail_sum = jnp.sum(x_tail) + jnp.sum(t_tail)
        x_main = x[:n_main]
        t_main = t[:n_main]
    else:
        tail_prod = jnp.float32(0.0)
        tail_sum = jnp.float32(0.0)
        x_main = x
        t_main = t

    # Inputs keep their original dtype through the DMA; cast happens in-kernel.
    x2 = x_main.reshape(rows, LANE)
    t2 = t_main.reshape(rows, LANE)

    grid_blocks = pl.cdiv(rows, block_rows)
    needs_mask = (rows % block_rows) != 0

    # Always split over 2 cores when >1 block (v7x megacore); odd block counts
    # are padded with one phantom step the kernel skips.  On single-core chips
    # the leading axis is just a sequential outer loop.
    n_cores = 2 if grid_blocks >= 2 else 1
    steps = pl.cdiv(grid_blocks, n_cores)
    has_phantom = (n_cores * steps) > grid_blocks
    last_block = grid_blocks - 1

    kernel = functools.partial(
        _dice_partials_kernel,
        block_rows=block_rows,
        chunk_rows=chunk_rows,
        steps_per_core=steps,
        grid_blocks=grid_blocks,
        total_rows=rows,
        needs_mask=needs_mask,
        has_phantom=has_phantom,
    )

    def in_map(p, s):
        # Clamp so the phantom padded step never issues an out-of-bounds DMA.
        return (jnp.minimum(p * steps + s, last_block), 0)

    prod_part, sum_part = pl.pallas_call(
        kernel,
        out_shape=(
            jax.ShapeDtypeStruct((n_cores, SUBLANE, LANE), jnp.float32),
            jax.ShapeDtypeStruct((n_cores, SUBLANE, LANE), jnp.float32),
        ),
        grid_spec=pltpu.PrefetchScalarGridSpec(
            num_scalar_prefetch=0,
            grid=(n_cores, steps),
            in_specs=[
                pl.BlockSpec((block_rows, LANE), in_map),
                pl.BlockSpec((block_rows, LANE), in_map),
            ],
            out_specs=(
                pl.BlockSpec((1, SUBLANE, LANE), lambda p, s: (p, 0, 0)),
                pl.BlockSpec((1, SUBLANE, LANE), lambda p, s: (p, 0, 0)),
            ),
        ),
        compiler_params=pltpu.CompilerParams(
            dimension_semantics=("parallel", "arbitrary"),
            vmem_limit_bytes=vmem_limit_bytes,
        ),
    )(x2, t2)

    # Tiny final reduction (<= 2 KiB) + scalar dice math in plain JAX.
    intersection = jnp.sum(prod_part) + tail_prod
    total = jnp.sum(sum_part) + tail_sum
    return _dice(intersection, total)


def dice_loss_ref(inputs, targets, smooth=1.0):
    x = inputs.reshape(-1).astype(jnp.float32)
    t = targets.reshape(-1).astype(jnp.float32)
    intersection = jnp.sum(x * t)
    dice = (2.0 * intersection + smooth) / (jnp.sum(x) + jnp.sum(t) + smooth)
    return 1.0 - dice


if __name__ == "__main__":
    key = jax.random.PRNGKey(0)
    k1, k2, k3, k4, k5, k6, k7, k8 = jax.random.split(key, 8)

    # Case 1: small NCHW logits/masks; even 2-way core split, no mask/phantom.
    B, C, H, W = 2, 4, 16, 16
    inputs = jax.nn.sigmoid(jax.random.normal(k1, (B, C, H, W), jnp.float32))
    targets = (jax.random.uniform(k2, (B, C, H, W)) > 0.5).astype(jnp.float32)
    loss = dice_loss(inputs, targets, smooth=1.0,
                     max_block_rows=8, chunk_rows=8, min_kernel_elems=0)
    loss = jax.block_until_ready(loss)
    ref = dice_loss_ref(inputs, targets, smooth=1.0)
    assert jnp.allclose(loss, ref, rtol=1e-5, atol=1e-5), (loss, ref)

    # Default parameters on the same small input -> tiny-input jnp fast path.
    loss_fast = jax.block_until_ready(dice_loss(inputs, targets, smooth=1.0))
    assert jnp.allclose(loss_fast, ref, rtol=1e-5, atol=1e-5), (loss_fast, ref)

    # Case 2: ragged last block (row mask) + odd block count (phantom step).
    B2, C2, H2, W2 = 2, 4, 24, 24
    inputs2 = jax.nn.sigmoid(jax.random.normal(k3, (B2, C2, H2, W2), jnp.float32))
    targets2 = (jax.random.uniform(k4, (B2, C2, H2, W2)) > 0.5).astype(jnp.float32)
    loss2 = dice_loss(inputs2, targets2, smooth=1.0,
                      max_block_rows=16, chunk_rows=8, min_kernel_elems=0)
    loss2 = jax.block_until_ready(loss2)
    ref2 = dice_loss_ref(inputs2, targets2, smooth=1.0)
    assert jnp.allclose(loss2, ref2, rtol=1e-5, atol=1e-5), (loss2, ref2)

    # Case 3: odd block count that divides rows exactly (phantom, no mask).
    B3, C3, H3, W3 = 2, 4, 16, 24
    inputs3 = jax.nn.sigmoid(jax.random.normal(k5, (B3, C3, H3, W3), jnp.float32))
    targets3 = (jax.random.uniform(k6, (B3, C3, H3, W3)) > 0.5).astype(jnp.float32)
    loss3 = dice_loss(inputs3, targets3, smooth=1.0,
                      max_block_rows=8, chunk_rows=8, min_kernel_elems=0)
    loss3 = jax.block_until_ready(loss3)
    ref3 = dice_loss_ref(inputs3, targets3, smooth=1.0)
    assert jnp.allclose(loss3, ref3, rtol=1e-5, atol=1e-5), (loss3, ref3)

    # Case 4: element count not a multiple of 128 -> wrapper tail sum, and
    # rows not a multiple of 8 -> masked ragged block.
    shape4 = (3, 5, 7, 11)
    inputs4 = jax.nn.sigmoid(jax.random.normal(k7, shape4, jnp.float32))
    targets4 = (jax.random.uniform(k8, shape4) > 0.5).astype(jnp.float32)
    loss4 = dice_loss(inputs4, targets4, smooth=1.0,
                      max_block_rows=8, chunk_rows=8, min_kernel_elems=0)
    loss4 = jax.block_until_ready(loss4)
    ref4 = dice_loss_ref(inputs4, targets4, smooth=1.0)
    assert jnp.allclose(loss4, ref4, rtol=1e-5, atol=1e-5), (loss4, ref4)

    print("KERNEL_OK")
</pallas_src>

<mosaic_0001>
module attributes {stable_mosaic.version = 11 : i64} {
  func.func @_dice_partials_kernel(%arg0: i32, %arg1: i32, %arg2: memref<8x128xf32, #tpu.memory_space<vmem>>, %arg3: memref<8x128xf32, #tpu.memory_space<vmem>>, %arg4: memref<1x8x128xf32, #tpu.memory_space<vmem>>, %arg5: memref<1x8x128xf32, #tpu.memory_space<vmem>>) attributes {dimension_semantics = [#tpu.dimension_semantics<parallel>, #tpu.dimension_semantics<arbitrary>], iteration_bounds = array<i64: 2, 1>, scalar_prefetch = 0 : i64, scratch_operands = 0 : i64, tpu.core_type = #tpu.core_type<tc>, window_params = [{transform_indices = @transform_0, window_bounds = array<i64: 8, 128>}, {transform_indices = @transform_1, window_bounds = array<i64: 8, 128>}, {transform_indices = @transform_2, window_bounds = array<i64: 1, 8, 128>}, {transform_indices = @transform_3, window_bounds = array<i64: 1, 8, 128>}]} {
    %c0_i32 = arith.constant 0 : i32
    %0 = arith.cmpi eq, %arg1, %c0_i32 : i32
    %1 = arith.extui %0 : i1 to i32
    %c0_i32_0 = arith.constant 0 : i32
    %2 = arith.cmpi ne, %1, %c0_i32_0 : i32
    scf.if %2 {
      %cst_18 = arith.constant 0.000000e+00 : f32
      %29 = vector.broadcast %cst_18 : f32 to vector<1x8x128xf32>
      %c0_19 = arith.constant 0 : index
      %c0_20 = arith.constant 0 : index
      %c0_21 = arith.constant 0 : index
      %30 = vector.load %arg4[%c0_19, %c0_20, %c0_21] : memref<1x8x128xf32, #tpu.memory_space<vmem>>, vector<1x8x128xf32>
      tpu.vector_store %arg4[%c0_19, %c0_20, %c0_21], %29 {strides = array<i32>} : memref<1x8x128xf32, #tpu.memory_space<vmem>>, vector<1x8x128xf32>,
      %cst_22 = arith.constant 0.000000e+00 : f32
      %31 = vector.broadcast %cst_22 : f32 to vector<1x8x128xf32>
      %c0_23 = arith.constant 0 : index
      %c0_24 = arith.constant 0 : index
      %c0_25 = arith.constant 0 : index
      %32 = vector.load %arg5[%c0_23, %c0_24, %c0_25] : memref<1x8x128xf32, #tpu.memory_space<vmem>>, vector<1x8x128xf32>
      tpu.vector_store %arg5[%c0_23, %c0_24, %c0_25], %31 {strides = array<i32>} : memref<1x8x128xf32, #tpu.memory_space<vmem>>, vector<1x8x128xf32>,
    } else {
    }
    %c0_i32_1 = arith.constant 0 : i32
    %c1_i32 = arith.constant 1 : i32
    %3 = arith.muli %c0_i32_1, %c1_i32 : i32
    %c0_i32_2 = arith.constant 0 : i32
    %4 = arith.addi %c0_i32_2, %3 : i32
    %c8_i32 = arith.constant 8 : i32
    %5 = arith.muli %4, %c8_i32 : i32
    %6 = tpu.assume_multiple %5, 8 : i32
    %7 = arith.index_cast %6 : i32 to index
    %c0 = arith.constant 0 : index
    %8 = vector.load %arg2[%7, %c0] : memref<8x128xf32, #tpu.memory_space<vmem>>, vector<8x128xf32>
    %9 = arith.index_cast %6 : i32 to index
    %c0_3 = arith.constant 0 : index
    %10 = vector.load %arg3[%9, %c0_3] : memref<8x128xf32, #tpu.memory_space<vmem>>, vector<8x128xf32>
    %11 = arith.mulf %8, %10 : vector<8x128xf32>
    %12 = vector.shape_cast %11 : vector<8x128xf32> to vector<1x8x128xf32>
    %cst = arith.constant dense<0.000000e+00> : vector<8x128xf32>
    %13 = vector.multi_reduction <add>, %12, %cst [0] : vector<1x8x128xf32> to vector<8x128xf32>
    %14 = arith.addf %8, %10 : vector<8x128xf32>
    %15 = vector.shape_cast %14 : vector<8x128xf32> to vector<1x8x128xf32>
    %cst_4 = arith.constant dense<0.000000e+00> : vector<8x128xf32>
    %16 = vector.multi_reduction <add>, %15, %cst_4 [0] : vector<1x8x128xf32> to vector<8x128xf32>
    %c0_5 = arith.constant 0 : index
    %c0_6 = arith.constant 0 : index
    %c0_7 = arith.constant 0 : index
    %17 = vector.load %arg4[%c0_5, %c0_6, %c0_7] : memref<1x8x128xf32, #tpu.memory_space<vmem>>, vector<1x8x128xf32>
    %18 = vector.shape_cast %17 : vector<1x8x128xf32> to vector<8x128xf32>
    %19 = arith.addf %18, %13 : vector<8x128xf32>
    %c0_8 = arith.constant 0 : index
    %c0_9 = arith.constant 0 : index
    %c0_10 = arith.constant 0 : index
    %20 = vector.load %arg4[%c0_8, %c0_9, %c0_10] : memref<1x8x128xf32, #tpu.memory_space<vmem>>, vector<1x8x128xf32>
    %21 = vector.shape_cast %20 : vector<1x8x128xf32> to vector<8x128xf32>
    %22 = vector.shape_cast %19 : vector<8x128xf32> to vector<1x8x128xf32>
    tpu.vector_store %arg4[%c0_8, %c0_9, %c0_10], %22 {strides = array<i32>} : memref<1x8x128xf32, #tpu.memory_space<vmem>>, vector<1x8x128xf32>,
    %c0_11 = arith.constant 0 : index
    %c0_12 = arith.constant 0 : index
    %c0_13 = arith.constant 0 : index
    %23 = vector.load %arg5[%c0_11, %c0_12, %c0_13] : memref<1x8x128xf32, #tpu.memory_space<vmem>>, vector<1x8x128xf32>
    %24 = vector.shape_cast %23 : vector<1x8x128xf32> to vector<8x128xf32>
    %25 = arith.addf %24, %16 : vector<8x128xf32>
    %c0_14 = arith.constant 0 : index
    %c0_15 = arith.constant 0 : index
    %c0_16 = arith.constant 0 : index
    %26 = vector.load %arg5[%c0_14, %c0_15, %c0_16] : memref<1x8x128xf32, #tpu.memory_space<vmem>>, vector<1x8x128xf32>
    %27 = vector.shape_cast %26 : vector<1x8x128xf32> to vector<8x128xf32>
    %28 = vector.shape_cast %25 : vector<8x128xf32> to vector<1x8x128xf32>
    tpu.vector_store %arg5[%c0_14, %c0_15, %c0_16], %28 {strides = array<i32>} : memref<1x8x128xf32, #tpu.memory_space<vmem>>, vector<1x8x128xf32>,
    %c1_i32_17 = arith.constant 1 : i32
    return
  }
  func.func @transform_0(%arg0: i32, %arg1: i32) -> (i32, i32) {
    %c1_i32 = arith.constant 1 : i32
    %0 = arith.muli %arg0, %c1_i32 : i32
    %1 = arith.addi %0, %arg1 : i32
    %c1_i32_0 = arith.constant 1 : i32
    %2 = arith.minsi %1, %c1_i32_0 : i32
    %c0_i32 = arith.constant 0 : i32
    %c0_i32_1 = arith.constant 0 : i32
    return %2, %c0_i32 : i32, i32
  }
  func.func @transform_1(%arg0: i32, %arg1: i32) -> (i32, i32) {
    %c1_i32 = arith.constant 1 : i32
    %0 = arith.muli %arg0, %c1_i32 : i32
    %1 = arith.addi %0, %arg1 : i32
    %c1_i32_0 = arith.constant 1 : i32
    %2 = arith.minsi %1, %c1_i32_0 : i32
    %c0_i32 = arith.constant 0 : i32
    %c0_i32_1 = arith.constant 0 : i32
    return %2, %c0_i32 : i32, i32
  }
  func.func @transform_2(%arg0: i32, %arg1: i32) -> (i32, i32, i32) {
    %c0_i32 = arith.constant 0 : i32
    %c0_i32_0 = arith.constant 0 : i32
    %c0_i32_1 = arith.constant 0 : i32
    return %arg0, %c0_i32, %c0_i32_0 : i32, i32, i32
  }
  func.func @transform_3(%arg0: i32, %arg1: i32) -> (i32, i32, i32) {
    %c0_i32 = arith.constant 0 : i32
    %c0_i32_0 = arith.constant 0 : i32
    %c0_i32_1 = arith.constant 0 : i32
    return %arg0, %c0_i32, %c0_i32_0 : i32, i32, i32
  }
}

</mosaic_0001>

<bundles_post_ra>
// kernel: tpu_custom_call.1
= control target key start
LH: loop header
LB: loop body
LE: loop exit
PB: predicated region body
PF: predicated region fallthrough
CT: control target
= control target key end

     0   :  { %s1025_s0 = inlined_call_operand.hbm [shape: f32[16,128], index: 0, kind: input, shape index: {}]   ;;  %s1026_s1 = inlined_call_operand.hbm [shape: f32[16,128], index: 1, kind: input, shape index: {}]   ;;  %s1027_s2 = inlined_call_operand.hbm [shape: f32[2,8,128], index: 2, kind: output, shape index: {0}]   ;;  %s1028_s3 = inlined_call_operand.hbm [shape: f32[2,8,128], index: 3, kind: output, shape index: {1}]  }
   0x1   :  { %1030 = sst [smem:[#allocation15_spill]] %s1025_s0 }
   0x2   :  { %9 = vsyncpa [#allocation3], 0 }
   0x3   :  { %11 = vsyncpa [#allocation3 + $0x1], 0 }
   0x4   :  { %12 = vsyncpa [#allocation6], 0 }
   0x5   :  { %14 = vsyncpa [#allocation6 + $0x1], 0 }
   0x6   :  { %15 = vsyncpa [#allocation4], 0 }
   0x7   :  { %17 = vsyncpa [#allocation4 + $0x1], 0 }
   0x8   :  { %18 = vsyncpa [#allocation9], 0 }
   0x9   :  { %20 = vsyncpa [#allocation9 + $0x1], 0  ;;  %s789_s12 = smov 0   ;;  %s791_s13 = smov 0  }
   0xa   :  { %s793_s14 = smov 0   ;;  %s795_s15 = smov 0  }
   0xb   :  { %s797_s16 = smov 0   ;;  %s799_s17 = smov 0  }
   0xc   :  { %s801_s18 = smov 0   ;;  %s803_s19 = smov 0  }
   0xd   :  { %s805_s20 = smov 0  }
   0xe LB: > { %s453_s21 = sadd.s32 4294967295, %s763_s20   ;;  %s454_s22 = sadd.s32 4294967294, %s763_s20   ;;  %s763_s20 = sphi %s805_s20, %s26_s20   ;;  %s759_s19 = sphi %s803_s19, %s1048_s19   ;;  %s755_s18 = sphi %s801_s18, %s1047_s18   ;;  %s751_s17 = sphi %s799_s17, %s1046_s17   ;;  %s747_s16 = sphi %s797_s16, %s1045_s16   ;;  %s743_s15 = sphi %s795_s15, %s1044_s15   ;;  %s739_s14 = sphi %s793_s14, %s1043_s14   ;;  %s735_s13 = sphi %s791_s13, %s1042_s13   ;;  %s731_s12 = sphi %s789_s12, %s1041_s12  }
   0xf   : > { %s38_s23 = sadd.s32 1, %s759_s19  ;;  %p43_p0 = scmp.lt.s32.totalorder %s759_s19, 1 }
  0x10   : > { %p40_p1 = scmp.ge.s32.totalorder %s38_s23, 2  ;;  %s51_s24 = sadd.s32 1, %s751_s17 }
  0x11   : > { %s838_s25 = scalar_select %p43_p0, %s759_s19, 1 }
  0x12   : > { %s1050_s23 = smov (%p40_p1, %s38_s23), 0  ;;  %p58_p2 = scmp.ne.s32.totalorder %s751_s17, %s747_s16 }
  0x13   : > { %1031 = sst [smem:[#allocation14_spill]] %s1050_s23  ;;  %p59_p3 = scmp.eq.s32.totalorder %s763_s20, 0 }
  0x14   : > { %p46_p4 = scmp.lt.s32.totalorder %s1050_s23, 1  ;;  %p64_p5 = scmp.ne.s32.totalorder %s747_s16, %s743_s15 }
  0x15   : > { %p847_p6 = por %p59_p3, %p58_p2  ;;  %p65_p7 = scmp.eq.s32.totalorder %s453_s21, 0 }
  0x16   : > { %s47_s27 = scalar_select %p46_p4, %s1050_s23, 1 }
  0x17   : > { %p852_p8 = por %p65_p7, %p64_p5  ;;  %s106_s29 = ssub.s32 %s759_s19, %s1050_s23 }
  0x18   : > { %s48_s30 = ssub.s32 %s838_s25, %s47_s27  ;;  %p107_p9 = scmp.eq.s32.totalorder %s106_s29, 0 }
  0x19   : > { %p49_p10 = scmp.eq.s32.totalorder %s48_s30, 0  ;;  %s109_s4 = sadd.s32 1, %s739_s14 }
  0x1a   : > { %s861_s5 = scalar_select %p107_p9, %s739_s14, %s109_s4  }
  0x1b   : > { %s864_s6 = scalar_select %p49_p10, %s751_s17, %s51_s24  }
  0x1c   : > { %p119_p11 = scmp.ne.s32.totalorder %s739_s14, %s735_s13  ;;  %p120_p12 = scmp.eq.s32.totalorder %s453_s21, 1 }
  0x1d   : > { %p125_p13 = scmp.ne.s32.totalorder %s735_s13, %s731_s12  ;;  %p126_p0 = scmp.eq.s32.totalorder %s454_s22, 1 }
  0x1e   : > { %p870_p1 = por %p120_p12, %p119_p11  ;;  %p494_p4 = scmp.lt.s32.totalorder %s763_s20, 2 }
  0x1f   : > { %p875_p3 = por %p126_p0, %p125_p13  ;;  %s881_s9 = sand.u32 1, %s751_s17  }
  0x20   : > { %s458_s10 = sshll.u32 %s838_s25, 7  ;;  %s457_s11 = sshll.u32 %s881_s9, 3 }
  0x21   : > { %s1036_s0 = sld [smem:[#allocation15_spill]]  ;;  %s176_s24 = scalar_lea.vmem [#allocation2], %s457_s11 }
  0x22   : > { %s186_s27 = sshll.u32 %s176_s24, 4  ;;  %p890_p5 = pnand %p494_p4, %p847_p6  ;;  %s187_s27 = int_to_ptr.vmem [resolvable:$true] %s186_s27 }
  0x23   : > { %p461_p7 = scmp.ge.s32.totalorder %s763_s20, 1  ;;  %p212_p9 = scmp.lt.s32.totalorder %s763_s20, 3 }
  0x24   : > { %s173_s30 = scalar_lea.sflag [#allocation3], %s881_s9  ;;  %p571_p10 = pneg %p890_p5 }
  0x25   : > { %s582_s25 = scalar_lea.vmem %s187_s27, 128  ;;  %s765_s4 = smov [#allocation2]  }
  0x26   : > { %p583_p11 = scmp.ne.s32.totalorder %s187_s27, %s582_s25  ;;  %s587_s26 = sshll.u32 %s765_s4, 4  ;;  %s588_s26 = int_to_ptr.vmem [resolvable:$false] %s587_s26 }
  0x27   : > { %s184_s22 = scalar_lea.hbm %s1036_s0, %s458_s10  ;;  %s589_s15 = scalar_lea.vmem %s588_s26, 256 }
  0x28   : > { %p585_p12 = pnand %p583_p11, %p571_p10  ;;  %p590_p6 = scmp.lt.s32.totalorder %s187_s27, %s588_s26 }
  0x29   : > { %p591_p0 = scmp.lt.s32.totalorder %s589_s15, %s582_s25 }
  0x2a   : > { %p586_p13 = pneg %p585_p12 }
  0x2b   : > { %p592_p4 = por %p591_p0, %p590_p6 }
  0x2d   : > { %p593_p2 = pnand %p592_p4, %p586_p13 }
  0x2f   : > { %596 = shalt.err (!%p593_p2)
}
  0x30   : > { %483 = dma.hbm_to_vmem [thread:$0]  (!%p890_p5), %s184_s22, 128, %s187_s27, %s173_s30  }
  0x31   : > { %p908_p11 = pnand %p461_p7, %p212_p9  ;;  %s205_s25 = scalar_lea.hbm %s1026_s1, %s458_s10 }
  0x32   : > { %s197_s26 = scalar_lea.vmem [#allocation5], %s457_s11  ;;  %s194_s0 = scalar_lea.sflag [#allocation6], %s881_s9 }
  0x33   : > { %s207_s15 = sshll.u32 %s197_s26, 4  ;;  %s766_s22 = smov [#allocation5]   ;;  %s208_s15 = int_to_ptr.vmem [resolvable:$true] %s207_s15 }
  0x34   : > { %s610_s23 = scalar_lea.vmem %s208_s15, 128  ;;  %s615_s27 = sshll.u32 %s766_s22, 4  ;;  %s616_s27 = int_to_ptr.vmem [resolvable:$false] %s615_s27 }
  0x35   : > { %p611_p2 = scmp.ne.s32.totalorder %s208_s15, %s610_s23  ;;  %s617_s30 = scalar_lea.vmem %s616_s27, 256 }
  0x36   : > { %p618_p7 = scmp.lt.s32.totalorder %s208_s15, %s616_s27  ;;  %p619_p9 = scmp.lt.s32.totalorder %s617_s30, %s610_s23 }
  0x37   : > { %p613_p12 = pnand %p611_p2, %p571_p10 }
  0x38   : > { %p620_p6 = por %p619_p9, %p618_p7 }
  0x39   : > { %p614_p13 = pneg %p613_p12 }
  0x3b   : > { %p621_p0 = pnand %p620_p6, %p614_p13 }
  0x3d   : > { %624 = shalt.err (!%p621_p0)
}
  0x3e   : > { %486 = dma.hbm_to_vmem [thread:$0]  (!%p890_p5), %s205_s25, 128, %s208_s15, %s194_s0  }
  0x3f   : > { %216 = sbr.rel (%p908_p11) target bundleno = 119 (0x77), region = 28  ;;  %s218_s9 = sand.u32 (!%p908_p11), 1, %s747_s16  }
  0x40   : > { %s462_s10 = sshll.u32 (!%p908_p11), %s218_s9, 3  ;;  %s219_s11 = scalar_lea.sflag (!%p908_p11), [#allocation3], %s218_s9 }
  0x41   : > { %s222_s24 = scalar_lea.vmem (!%p908_p11), [#allocation2], %s462_s10 }
  0x44   : > { %714 = dma.done.wait (%p852_p8), %s219_s11, 128  }
  0x45   : > { %716 = vsyncadd (%p852_p8), %s219_s11, 4294967168  ;;  %s228_s23 = scalar_lea.sflag [#allocation6], %s218_s9  ;;  %s231_s4 = scalar_lea.vmem [#allocation5], %s462_s10 }
  0x46   : > { %718 = dma.done.wait (%p852_p8), %s228_s23, 128  }
  0x47   : > { %720 = vsyncadd (%p852_p8), %s228_s23, 4294967168  ;;  %s933_s0 = sand.u32 1, %s735_s13   ;;  %s468_s21 = sshll.u32 %s755_s18, 7  ;;  %v276_v0 = vld [vmem:[%s222_s24] sm:$0xff]  ;;  %v277_v1 = vld [vmem:[%s231_s4] sm:$0xff] }
  0x48   : > { %s464_s29 = sshll.u32 %s933_s0, 3  ;;  %v278_v2 = vmul.f32 %v277_v1, %v276_v0  ;;  %v280_v3 = vadd.f32 %v277_v1, %v276_v0  ;;  %s940_s30 = scalar_lea.hbm %s1027_s2, %s468_s21 }
  0x49   : > { %s256_s25 = scalar_lea.vmem [#allocation7], %s464_s29  ;;  %s263_s15 = scalar_lea.vmem [#allocation8], %s464_s29 }
  0x4a   : > { %s307_s26 = sshll.u32 %s256_s25, 4  ;;  %s320_s22 = sshll.u32 %s263_s15, 4  ;;  %284 = vst [vmem:[%s256_s25] sm:$0xff] %v278_v2  ;;  %287 = vst [vmem:[%s263_s15] sm:$0xff] %v280_v3  ;;  %s942_s26 = int_to_ptr.vmem [resolvable:$true] %s307_s26  ;;  %s949_s22 = int_to_ptr.vmem [resolvable:$true] %s320_s22 }
  0x4b   : > { %s947_s18 = scalar_lea.hbm %s1028_s3, %s468_s21  ;;  %s289_s11 = scalar_lea.sflag [#allocation4], %s933_s0 }
  0x4c   : > { %s625_s24 = scalar_lea.vmem %s942_s26, 128  ;;  %s767_s23 = smov [#allocation7]  }
  0x4d   : > { %p626_p8 = scmp.ne.s32.totalorder %s942_s26, %s625_s24  ;;  %s629_s4 = sshll.u32 %s767_s23, 4  ;;  %s630_s4 = int_to_ptr.vmem [resolvable:$false] %s629_s4 }
  0x4e   : > { %s631_s29 = scalar_lea.vmem %s630_s4, 256  ;;  %p632_p4 = scmp.lt.s32.totalorder %s942_s26, %s630_s4 }
  0x4f   : > { %p627_p5 = pnand %p626_p8, %p870_p1  ;;  %p633_p11 = scmp.lt.s32.totalorder %s631_s29, %s625_s24 }
  0x51   : > { %p628_p10 = pneg %p627_p5  ;;  %p634_p2 = por %p633_p11, %p632_p4 }
  0x53   : > { %p635_p12 = pnand %p634_p2, %p628_p10 }
  0x55   : > { %638 = shalt.err (!%p635_p12)
}
  0x56   : > { %s639_s21 = scalar_lea.hbm %s940_s30, 128  ;;  %s643_s27 = scalar_lea.hbm %s1027_s2, 256 }
  0x57   : > { %p640_p13 = scmp.ne.s32.totalorder %s940_s30, %s639_s21  ;;  %p644_p6 = scmp.lt.s32.totalorder %s940_s30, %s1027_s2 }
  0x58   : > { %p645_p0 = scmp.lt.s32.totalorder %s643_s27, %s639_s21 }
  0x59   : > { %p641_p7 = pnand %p640_p13, %p870_p1 }
  0x5a   : > { %p646_p8 = por %p645_p0, %p644_p6 }
  0x5b   : > { %p642_p9 = pneg %p641_p7 }
  0x5d   : > { %p647_p5 = pnand %p646_p8, %p642_p9 }
  0x5f   : > { %650 = shalt.err (!%p647_p5)
}
  0x60   : > { %476 = dma.vmem_to_hbm [thread:$0]  (%p870_p1), %s942_s26, 128, %s940_s30, %s289_s11  }
  0x61   : > { %s294_s10 = scalar_lea.sflag [#allocation9], %s933_s0  ;;  %s651_s24 = scalar_lea.vmem %s949_s22, 128 }
  0x62   : > { %p652_p10 = scmp.ne.s32.totalorder %s949_s22, %s651_s24  ;;  %s768_s23 = smov [#allocation8]  }
  0x63   : > { %s655_s4 = sshll.u32 %s768_s23, 4  ;;  %s656_s4 = int_to_ptr.vmem [resolvable:$false] %s655_s4 }
  0x64   : > { %p653_p4 = pnand %p652_p10, %p870_p1  ;;  %s657_s29 = scalar_lea.vmem %s656_s4, 256 }
  0x65   : > { %p658_p2 = scmp.lt.s32.totalorder %s949_s22, %s656_s4  ;;  %p659_p12 = scmp.lt.s32.totalorder %s657_s29, %s651_s24 }
  0x66   : > { %p654_p11 = pneg %p653_p4 }
  0x67   : > { %p660_p13 = por %p659_p12, %p658_p2 }
  0x69   : > { %p661_p7 = pnand %p660_p13, %p654_p11 }
  0x6b   : > { %664 = shalt.err (!%p661_p7)
}
  0x6c   : > { %s665_s26 = scalar_lea.hbm %s947_s18, 128  ;;  %s669_s11 = scalar_lea.hbm %s1028_s3, 256 }
  0x6d   : > { %p666_p9 = scmp.ne.s32.totalorder %s947_s18, %s665_s26  ;;  %p670_p8 = scmp.lt.s32.totalorder %s947_s18, %s1028_s3 }
  0x6e   : > { %p671_p5 = scmp.lt.s32.totalorder %s669_s11, %s665_s26 }
  0x6f   : > { %p667_p6 = pnand %p666_p9, %p870_p1 }
  0x70   : > { %p672_p10 = por %p671_p5, %p670_p8 }
  0x71   : > { %p668_p0 = pneg %p667_p6 }
  0x73   : > { %p673_p4 = pnand %p672_p10, %p668_p0 }
  0x75   : > { %676 = shalt.err (!%p673_p4)
}
  0x76   : > { %477 = dma.vmem_to_hbm [thread:$0]  (%p870_p1), %s949_s22, 128, %s947_s18, %s294_s10  }
  0x77 PF: > { %s332_s15 = sand.u32 1, %s731_s12   ;;  %p1039_p11 = scmp.ge.s32.totalorder %s763_s20, 2 }
  0x78   : > { %s333_s27 = scalar_lea.sflag [#allocation4], %s332_s15 }
  0x79   : > { %p488_p2 = pnand %p1039_p11, %p875_p3 }
  0x7b   : > { %p489_p12 = pneg %p488_p2 }
  0x7d   : > { %722 = dma.done.wait (%p489_p12), %s333_s27, 128  }
  0x7e   : > { %724 = vsyncadd (%p489_p12), %s333_s27, 4294967168  ;;  %s342_s28 = scalar_lea.sflag [#allocation9], %s332_s15 }
  0x7f   : > { %726 = dma.done.wait (%p489_p12), %s342_s28, 128  }
  0x80   : > { %728 = vsyncadd (%p489_p12), %s342_s28, 4294967168  ;;  %s26_s20 = sadd.s32 1, %s763_s20   ;;  %s1040_s7 = sld [smem:[#allocation14_spill]] }
  0x81   : > { %p23_p13 = scmp.ge.s32.totalorder %s26_s20, 4   ;;  %s1041_s12 = smov %s735_s13 }
  0x82   : > { %s1042_s13 = smov %s739_s14  ;;  %s1043_s14 = smov %s861_s5 }
  0x83   : > { %s1044_s15 = smov %s747_s16  ;;  %s1045_s16 = smov %s751_s17 }
  0x84   : > { %s1046_s17 = smov %s864_s6  ;;  %s1047_s18 = smov %s759_s19 }
  0x85   :  { %25 = sbr.rel (!%p23_p13) target bundleno = 14 (0xe), region = 107 }
  0x86   : > { %s1048_s19 = smov %s1040_s7 }
  0x8a   :  { %347 = vsyncpa [#allocation3], 1 }
  0x8b   :  { %349 = vsyncpa [#allocation3 + $0x1], 1 }
  0x8c   :  { %350 = vsyncpa [#allocation6], 1 }
  0x8d   :  { %352 = vsyncpa [#allocation6 + $0x1], 1 }
  0x8e   :  { %353 = vsyncpa [#allocation4], 1 }
  0x8f   :  { %355 = vsyncpa [#allocation4 + $0x1], 1 }
  0x90   :  { %356 = vsyncpa [#allocation9], 1 }
  0x91   :  { %358 = vsyncpa [#allocation9 + $0x1], 1 }

</bundles_post_ra>
